<compile_context>
chip_gen: v7x
topology: tpu7x:2x2x1
jax: 0.10.0
libtpu: 0.0.40
codegen_flags: <defaults>
</compile_context>

<pallas_src>
import functools

import jax
import jax.numpy as jnp
from jax.experimental import pallas as pl
from jax.experimental.pallas import tpu as pltpu

_GOLDEN = -1640531527          # 0x9E3779B9 as int32 (seed mixing constant)
_M1 = 0x85EBCA6B               # murmur3 finalizer constants (uint32)
_M2 = 0xC2B2AE35


def _round_up(x: int, m: int) -> int:
    return (x + m - 1) // m * m


def _pos_enc_kernel(seed_ref, x_ref, pe_ref, o_ref, *, p: float, train: bool,
                    tb: int, chunk: int, row_len: int,
                    chunk_axis: int, batch_axis: int):
    """y = x + pe (sublane-broadcast), then inverted dropout in training mode."""
    # (tb, chunk) + (1, chunk): broadcast add, accumulated in f32.
    y = x_ref[...].astype(jnp.float32) + pe_ref[...].astype(jnp.float32)

    if train and p >= 1.0:
        y = jnp.zeros_like(y)
    elif train and p > 0.0:
        j = pl.program_id(chunk_axis)        # sequence-chunk index
        bb = pl.program_id(batch_axis)       # batch-block index
        row = jax.lax.broadcasted_iota(jnp.int32, y.shape, 0)
        lane = jax.lax.broadcasted_iota(jnp.int32, y.shape, 1)
        # Global flat element index.  This may wrap in int32 for >2^31-element
        # tensors; the wrap keeps counters unique mod 2^32 (all the hash
        # needs), so do NOT "fix" it by widening only part of the expression.
        idx = (bb * tb + row) * row_len + j * chunk + lane
        h = pltpu.bitcast(idx + seed_ref[0] * _GOLDEN, jnp.uint32)
        # murmur3 finalizer in uint32: logical shifts come for free (no masks).
        h = h ^ (h >> 16)
        h = h * jnp.uint32(_M1)
        h = h ^ (h >> 13)
        h = h * jnp.uint32(_M2)
        h = h ^ (h >> 16)
        # Top-ish 24 bits -> uniform in [0, 2^24); compare as int32 (values are
        # positive, signed compare is equivalent and guaranteed to lower).
        r24 = pltpu.bitcast(h >> 8, jnp.int32)
        thresh = jnp.int32(int(round(p * (1 << 24))))
        keep = (r24 >= thresh).astype(jnp.float32)
        y = y * (keep * jnp.float32(1.0 / (1.0 - p)))   # select-free dropout

    o_ref[...] = y.astype(o_ref.dtype)


def _choose_tiling(B: int, row_len_p: int, itemsize: int,
                   target_bytes: int = 1 << 20):
    """Pick (tb, chunk, n_chunks).

    Blocks are lane-dense (chunk % 128 == 0 and chunk divides the padded row)
    and sublane-dense (tb == B when B <= sublane tile, else a multiple of it).
    Every padded per-stream VMEM buffer stays <= ~target_bytes, so three
    double-buffered streams (~6 MiB) fit the scoped-VMEM default on every
    generation (v5e 16 MiB, v6e 32 MiB, v7x 32 MiB scoped / 64 MiB physical).
    """
    sub = {4: 8, 2: 16, 1: 32}.get(itemsize, 8)   # min sublane tile for dtype
    tb = B if B <= sub else sub
    # pe's (1, chunk) block and x's (tb<=sub, chunk) block both pad to `sub`
    # sublanes -> budget the chunk against the padded footprint.
    max_chunk = max(128, (target_bytes // (sub * itemsize)) // 128 * 128)
    units = row_len_p // 128
    best = 1
    for u in range(1, units + 1):
        if units % u == 0 and u * 128 <= max_chunk:
            best = u
    chunk = best * 128
    n_chunks = row_len_p // chunk
    # Small rows / large batch: spend the leftover budget on more batch rows
    # per block (fewer ~0.35 us grid steps), never exceeding B.
    if B > sub and n_chunks == 1:
        grow = max(sub, (target_bytes // (chunk * itemsize)) // sub * sub)
        tb = min(grow, (B // sub) * sub)
    return tb, chunk, n_chunks


def learnable_positional_encoding(x, pe, *, dropout_p: float = 0.1,
                                  train: bool = False, seed: int = 0,
                                  donate_x: bool = False):
    """x: (B, S, D); pe: (1, max_len, D).  Returns x + pe[:, :S] (+ inverted
    dropout when train=True).  Vary `seed` every training step."""
    B, S, D = x.shape
    _, max_len, D2 = pe.shape
    assert D2 == D and S <= max_len

    itemsize = jnp.dtype(x.dtype).itemsize
    row_len = S * D
    row_len_p = _round_up(row_len, 128)

    # Free reshapes; pe[:, :S] is never materialized.  Row padding only
    # triggers for awkward S*D (keeps every block a multiple of 128 lanes).
    x_flat = x.reshape(B, row_len)
    if row_len_p != row_len:
        x_flat = jnp.pad(x_flat, ((0, 0), (0, row_len_p - row_len)))
    pe_flat = pe.reshape(1, max_len * D)
    seed_arr = jnp.asarray([seed], dtype=jnp.int32)

    tb, chunk, n_chunks = _choose_tiling(B, row_len_p, itemsize)
    b_blocks = (B + tb - 1) // tb

    if n_chunks == 1:
        # Single chunk: batch outermost so the megacore-sharded axis has >= 2
        # iterations (v7x's 2 TCs both get work); pe block index is constant
        # anyway, so it is still fetched only once.
        grid = (b_blocks, n_chunks)
        batch_axis, chunk_axis = 0, 1
        x_map = lambda b, j, seed: (b, j)
        pe_map = lambda b, j, seed: (0, j)
    else:
        # Chunk outermost: pe's block index is constant across the inner batch
        # sweep, so its DMA is issued once per chunk (not b_blocks times).
        grid = (n_chunks, b_blocks)
        batch_axis, chunk_axis = 1, 0
        x_map = lambda j, b, seed: (b, j)
        pe_map = lambda j, b, seed: (0, j)

    kernel = functools.partial(
        _pos_enc_kernel, p=float(dropout_p), train=bool(train), tb=tb,
        chunk=chunk, row_len=row_len_p, chunk_axis=chunk_axis,
        batch_axis=batch_axis)

    grid_spec = pltpu.PrefetchScalarGridSpec(
        num_scalar_prefetch=1,
        grid=grid,
        in_specs=[
            pl.BlockSpec((tb, chunk), x_map),   # x: sublane- and lane-dense
            pl.BlockSpec((1, chunk), pe_map),   # pe: broadcast inside kernel
        ],
        out_specs=pl.BlockSpec((tb, chunk), x_map),
    )

    out_flat = pl.pallas_call(
        kernel,
        out_shape=jax.ShapeDtypeStruct((B, row_len_p), x.dtype),
        grid_spec=grid_spec,
        compiler_params=pltpu.CompilerParams(
            # Counter-based RNG -> no cross-step state; both axes parallel.
            dimension_semantics=("parallel", "parallel")),
        # Optional: alias x into the output when the caller donates it (saves
        # one HBM output allocation / potential XLA copy; DMA bytes unchanged).
        input_output_aliases={1: 0} if donate_x else {},
    )(seed_arr, x_flat, pe_flat)

    if row_len_p != row_len:
        out_flat = out_flat[:, :row_len]
    return out_flat.reshape(B, S, D)


if __name__ == "__main__":
    key = jax.random.PRNGKey(0)
    k_x, k_pe, k_x2 = jax.random.split(key, 3)

    B, S, D = 2, 8, 32
    MAX_LEN = 500

    x = jax.random.normal(k_x, (B, S, D), dtype=jnp.float32)
    # Matches nn.Parameter(torch.rand(1, max_len, d_model)).uniform_(-0.1, 0.1)
    pe = jax.random.uniform(k_pe, (1, MAX_LEN, D), dtype=jnp.float32,
                            minval=-0.1, maxval=0.1)

    # Eval-mode forward: dropout is identity -> exact check against x + pe[:, :S]
    out_eval = jax.block_until_ready(
        learnable_positional_encoding(x, pe, dropout_p=0.1, train=False))
    ref = x + pe[:, :S, :]
    assert out_eval.shape == (B, S, D)
    assert jnp.allclose(out_eval, ref, atol=1e-6), "eval-mode mismatch"

    # Training-mode forward: inverted dropout -> every output element must be
    # either 0 or (x + pe) / (1 - p).
    p = 0.1
    out_train = jax.block_until_ready(
        learnable_positional_encoding(x, pe, dropout_p=p, train=True, seed=42))
    assert out_train.shape == (B, S, D)
    ref_scaled = ref / (1.0 - p)
    ok = (out_train == 0.0) | jnp.isclose(out_train, ref_scaled,
                                          rtol=1e-5, atol=1e-6)
    assert bool(jnp.all(ok)), "train-mode values must be 0 or scaled (x + pe)"
    drop_frac = float(jnp.mean((out_train == 0.0).astype(jnp.float32)))
    assert drop_frac < 0.5, f"implausible dropout fraction {drop_frac}"

    # Awkward shape: S*D not a multiple of 128 and B not a multiple of the
    # sublane tile -> exercises the padded-row + partial-batch-block path.
    B2, S2, D2 = 9, 5, 24
    x2 = jax.random.normal(k_x2, (B2, S2, D2), dtype=jnp.float32)
    pe2 = jax.random.uniform(k_pe, (1, MAX_LEN, D2), dtype=jnp.float32,
                             minval=-0.1, maxval=0.1)
    out2 = jax.block_until_ready(
        learnable_positional_encoding(x2, pe2, dropout_p=0.1, train=False))
    ref2 = x2 + pe2[:, :S2, :]
    assert out2.shape == (B2, S2, D2)
    assert jnp.allclose(out2, ref2, atol=1e-6), "awkward-shape eval mismatch"

    print("KERNEL_OK")
</pallas_src>

<mosaic_0001>
module attributes {stable_mosaic.version = 11 : i64} {
  func.func @_pos_enc_kernel(%arg0: i32, %arg1: i32, %arg2: memref<1xi32, #tpu.memory_space<smem>>, %arg3: memref<2x256xf32, #tpu.memory_space<vmem>>, %arg4: memref<1x256xf32, #tpu.memory_space<vmem>>, %arg5: memref<2x256xf32, #tpu.memory_space<vmem>>) attributes {dimension_semantics = [#tpu.dimension_semantics<parallel>, #tpu.dimension_semantics<parallel>], iteration_bounds = array<i64: 1, 1>, scalar_prefetch = 1 : i64, scratch_operands = 0 : i64, tpu.core_type = #tpu.core_type<tc>, window_params = [{transform_indices = @transform_0, window_bounds = array<i64: 2, 256>}, {transform_indices = @transform_1, window_bounds = array<i64: 1, 256>}, {transform_indices = @transform_2, window_bounds = array<i64: 2, 256>}]} {
    %c0 = arith.constant 0 : index
    %c0_0 = arith.constant 0 : index
    %0 = vector.load %arg3[%c0, %c0_0] : memref<2x256xf32, #tpu.memory_space<vmem>>, vector<2x256xf32>
    %c0_1 = arith.constant 0 : index
    %c0_2 = arith.constant 0 : index
    %1 = vector.load %arg4[%c0_1, %c0_2] : memref<1x256xf32, #tpu.memory_space<vmem>>, vector<1x256xf32>
    %2 = vector.broadcast %1 : vector<1x256xf32> to vector<2x256xf32>
    %3 = arith.addf %0, %2 : vector<2x256xf32>
    %c0_3 = arith.constant 0 : index
    %c0_4 = arith.constant 0 : index
    %4 = vector.load %arg5[%c0_3, %c0_4] : memref<2x256xf32, #tpu.memory_space<vmem>>, vector<2x256xf32>
    tpu.vector_store %arg5[%c0_3, %c0_4], %3 {strides = array<i32>} : memref<2x256xf32, #tpu.memory_space<vmem>>, vector<2x256xf32>,
    return
  }
  func.func @transform_0(%arg0: i32, %arg1: i32, %arg2: memref<1xi32, #tpu.memory_space<smem>>) -> (i32, i32) {
    %c0_i32 = arith.constant 0 : i32
    return %arg0, %arg1 : i32, i32
  }
  func.func @transform_1(%arg0: i32, %arg1: i32, %arg2: memref<1xi32, #tpu.memory_space<smem>>) -> (i32, i32) {
    %c0_i32 = arith.constant 0 : i32
    %c0_i32_0 = arith.constant 0 : i32
    return %c0_i32, %arg1 : i32, i32
  }
  func.func @transform_2(%arg0: i32, %arg1: i32, %arg2: memref<1xi32, #tpu.memory_space<smem>>) -> (i32, i32) {
    %c0_i32 = arith.constant 0 : i32
    return %arg0, %arg1 : i32, i32
  }
}

</mosaic_0001>

<bundles_post_ra>
// kernel: tpu_custom_call.1
= control target key start
LH: loop header
LB: loop body
LE: loop exit
PB: predicated region body
PF: predicated region fallthrough
CT: control target
= control target key end

     0   :  { %9 = vsyncpa [#allocation5], 0  ;;  %s222_s0 = inlined_call_operand.<no memory space> [shape: s32[1], index: 0, kind: input, shape index: {}]   ;;  %s223_s1 = inlined_call_operand.hbm [shape: f32[2,256], index: 1, kind: input, shape index: {}]   ;;  %s224_s2 = inlined_call_operand.hbm [shape: f32[1,16000], index: 2, kind: input, shape index: {}]   ;;  %s225_s3 = inlined_call_operand.hbm [shape: f32[2,256], index: 3, kind: output, shape index: {}]  }
   0x1   :  { %10 = vsyncpa [#allocation8], 0 }
   0x2   :  { %11 = vsyncpa [#allocation6], 0  ;;  %s152_s12 = smov [#allocation4]   ;;  %s153_s14 = smov [#allocation7]  }
   0x3   :  { %s18_s13 = sshll.u32 %s152_s12, 4  ;;  %s28_s15 = sshll.u32 %s153_s14, 4  ;;  %s19_s13 = int_to_ptr.vmem [resolvable:$true] %s18_s13  ;;  %s176_s15 = int_to_ptr.vmem [resolvable:$true] %s28_s15 }
   0x4   :  { %s80_s17 = scalar_lea.hbm %s223_s1, 64 }
   0x5   :  { %p81_p0 = scmp.ne.s32.totalorder %s223_s1, %s80_s17  ;;  %p84_p1 = scmp.lt.u32.totalorder %s80_s17, %s223_s1 }
   0x7   :  { %p86_p2 = pnand %p84_p1, %p81_p0 }
   0x9   :  { %89 = shalt.err (!%p86_p2)
}
   0xa   :  { %s90_s22 = scalar_lea.vmem %s19_s13, 64  ;;  %p95_p4 = scmp.lt.s32.totalorder %s19_s13, %s19_s13 }
   0xb   :  { %p91_p3 = scmp.ne.s32.totalorder %s19_s13, %s90_s22  ;;  %p96_p5 = scmp.lt.s32.totalorder %s90_s22, %s90_s22 }
   0xd   :  { %p97_p6 = por %p96_p5, %p95_p4 }
   0xf   :  { %p98_p7 = pnand %p97_p6, %p91_p3 }
  0x11   :  { %101 = shalt.err (!%p98_p7)
}
  0x12   :  { %21 = dma.hbm_to_vmem [thread:$0]  %s223_s1, 64, %s19_s13, [#allocation5]  }
  0x13   :  { %s102_s27 = scalar_lea.hbm %s224_s2, 32  ;;  %s104_s5 = scalar_lea.hbm %s224_s2, 2000 }
  0x14   :  { %p103_p8 = scmp.ne.s32.totalorder %s224_s2, %s102_s27  ;;  %p105_p9 = scmp.lt.u32.totalorder %s104_s5, %s102_s27 }
  0x15   :  { %p106_p10 = scmp.lt.u32.totalorder %s102_s27, %s224_s2 }
  0x17   :  { %p107_p11 = por %p106_p10, %p105_p9 }
  0x19   :  { %p108_p12 = pnand %p107_p11, %p103_p8 }
  0x1b   :  { %111 = shalt.err (!%p108_p12)
}
  0x1c   :  { %s112_s1 = scalar_lea.vmem %s176_s15, 32  ;;  %p117_p0 = scmp.lt.s32.totalorder %s176_s15, %s176_s15 }
  0x1d   :  { %p113_p13 = scmp.ne.s32.totalorder %s176_s15, %s112_s1  ;;  %p118_p1 = scmp.lt.s32.totalorder %s112_s1, %s112_s1 }
  0x1f   :  { %p119_p2 = por %p118_p1, %p117_p0 }
  0x21   :  { %p120_p3 = pnand %p119_p2, %p113_p13 }
  0x23   :  { %123 = shalt.err (!%p120_p3)
}
  0x24   :  { %31 = dma.hbm_to_vmem [thread:$0]  %s224_s2, 32, %s176_s15, [#allocation8]  }
  0x25   :  { %146 = dma.done.wait [#allocation5], 64  }
  0x26   :  { %147 = vsyncadd [#allocation5], 4294967232 }
  0x27   :  { %148 = dma.done.wait [#allocation8], 32  }
  0x28   :  { %149 = vsyncadd [#allocation8], 4294967264  ;;  %v41_v0 = vlaneseq  ;;  %v154_v1 = vmov 1983009808   ;;  %v39_v7 = vld [vmem:[#allocation7] sm:$0x3] }
  0x29   :  { %v51_v2 = vunpack.c.l.s4 %v154_v1  ;;  %v38_v12 = vld [vmem:[#allocation4] sm:$0xf]  ;;  %s155_s10 = smov [#allocation9]  }
  0x2a   :  { %v42_v3 = vshrl.u32 %v41_v0, 7  ;;  %s66_s11 = sshll.u32 %s155_s10, 4  ;;  %s67_s11 = int_to_ptr.vmem [resolvable:$true] %s66_s11 }
  0x2b   :  { %v52_v6 = vunpack.c.0.s8 %v51_v2  ;;  %s124_s2 = scalar_lea.vmem %s67_s11, 64  ;;  %p129_p5 = scmp.lt.s32.totalorder %s67_s11, %s67_s11 }
  0x2c   :  { %v43_v4 = vsub.s32 0, %v42_v3  ;;  %v47_v5 = vsub.s32 1, %v42_v3  ;;  %p125_p4 = scmp.ne.s32.totalorder %s67_s11, %s124_s2  ;;  %p130_p6 = scmp.lt.s32.totalorder %s124_s2, %s124_s2 }
  0x2d   :  { %v55_v10 = vsub.s32 %v52_v6, %v42_v3 }
  0x2e   :  { %v44_v8 = vrot.slane %v39_v7, %v43_v4  ;;  %v48_v9 = vrot.slane %v39_v7, %v47_v5  ;;  %p131_p7 = por %p130_p6, %p129_p5 }
  0x30   :  { %v49_v11 = vcombine.low %v44_v8, %v48_v9  ;;  %p132_p8 = pnand %p131_p7, %p125_p4 }
  0x32   :  { %v56_v13 = vrot.slane %v49_v11, %v55_v10 }
  0x34   :  { %v58_v14 = vadd.f32 %v56_v13, %v38_v12 }
  0x36   :  { %59 = vst [vmem:[#allocation9] sm:$0xf] %v58_v14 }
  0x37   :  { %135 = shalt.err (!%p132_p8)
}
  0x38   :  { %s136_s14 = scalar_lea.hbm %s225_s3, 64 }
  0x39   :  { %p137_p9 = scmp.ne.s32.totalorder %s225_s3, %s136_s14  ;;  %p140_p10 = scmp.lt.u32.totalorder %s136_s14, %s225_s3 }
  0x3b   :  { %p142_p11 = pnand %p140_p10, %p137_p9 }
  0x3d   :  { %145 = shalt.err (!%p142_p11)
}
  0x3e   :  { %69 = dma.vmem_to_hbm [thread:$0]  %s67_s11, 64, %s225_s3, [#allocation6]  }
  0x3f   :  { %150 = dma.done.wait [#allocation6], 64  }
  0x40   :  { %151 = vsyncadd [#allocation6], 4294967232 }
  0x41   :  { %73 = vsyncpa [#allocation5], 1 }
  0x42   :  { %74 = vsyncpa [#allocation8], 1 }
  0x43   :  { %75 = vsyncpa [#allocation6], 1 }

</bundles_post_ra>
